<compile_context>
chip_gen: v5e
topology: v5e:2x2
jax: 0.10.0
libtpu: 0.0.40
codegen_flags: <defaults>
</compile_context>

<pallas_src>
import jax
import jax.numpy as jnp
from jax.experimental import pallas as pl
from jax.experimental.pallas import tpu as pltpu


def _cdiv(a: int, b: int) -> int:
    return (a + b - 1) // b


def _tpu_defaults():
    """(vmem_limit_bytes, max_parallel) per TPU generation."""
    try:
        kind = jax.devices()[0].device_kind.lower()
    except Exception:
        kind = ""
    if "v7" in kind or "7x" in kind:
        # v7x: 64 MiB VMEM per TensorCore, 2 TCs per chip -> split spatial axis.
        return 48 * 1024 * 1024, 2
    if "v5" in kind or "v6" in kind:
        # v5e/v5p/v6e: 128 MiB VMEM, single TensorCore -> big blocks, no split.
        return 96 * 1024 * 1024, 1
    # Unknown / older generation: conservative.
    return 32 * 1024 * 1024, 1


def _make_dice_partials_kernel(nc_tile, bt, hw, t_inner, needs_mask):
    """Accumulate per-row partial sums over one lane-dense (nc_tile, bt) tile."""

    def kernel(p_ref, l_ref, psum_ref, lsum_ref, inter_ref):
        t = pl.program_id(2)

        @pl.when(t == 0)
        def _():
            psum_ref[...] = jnp.zeros_like(psum_ref)
            lsum_ref[...] = jnp.zeros_like(lsum_ref)
            inter_ref[...] = jnp.zeros_like(inter_ref)

        p = p_ref[...].astype(jnp.float32)   # (nc_tile, bt)
        l = l_ref[...].astype(jnp.float32)   # (nc_tile, bt)

        if needs_mask:
            # Logical (un-clamped) column tile index -> zero out columns >= HW.
            part = pl.program_id(1)
            col0 = (part * t_inner + t) * bt
            cols = col0 + jax.lax.broadcasted_iota(jnp.int32, (nc_tile, bt), 1)
            valid = cols < hw
            p = jnp.where(valid, p, 0.0)
            l = jnp.where(valid, l, 0.0)

        psum_ref[...] += jnp.sum(p, axis=1, keepdims=True)[None, None]
        lsum_ref[...] += jnp.sum(l, axis=1, keepdims=True)[None, None]
        inter_ref[...] += jnp.sum(p * l, axis=1, keepdims=True)[None, None]

    return kernel


def dice_loss(probs, labels, smooth=1e-06, *,
              vmem_limit_bytes=None, max_parallel=None,
              nc_cap=1024, max_bt_cols=None):
    """Returns (per_class_dice_loss[C], total_dice_loss) like the PyTorch module.

    probs/labels may be f32, bf16, int8, bool, ... -- upcast to f32 in-kernel.
    """
    assert probs.shape == labels.shape
    N, C, H, W = probs.shape
    NC, HW = N * C, H * W

    default_vmem, default_par = _tpu_defaults()
    if vmem_limit_bytes is None:
        vmem_limit_bytes = default_vmem
    if max_parallel is None:
        max_parallel = default_par

    isz_p = probs.dtype.itemsize
    isz_l = labels.dtype.itemsize

    # ---- tiling plan -------------------------------------------------------
    lane = 128
    nc_tile = NC if NC <= nc_cap else nc_cap            # nc_cap is a multiple of 8
    n_row = _cdiv(NC, nc_tile)

    # VMEM live bytes per spatial column:
    #   2x double-buffered blocks of each input  +  ~3 f32 temporaries + mask.
    per_col = nc_tile * (2 * (isz_p + isz_l) + 16)
    budget = int(vmem_limit_bytes * 0.70)
    max_bt = max(lane, (budget // per_col) // lane * lane)
    if max_bt_cols is not None:                          # test / override hook
        max_bt = max(lane, min(max_bt, (max_bt_cols // lane) * lane))
    if HW >= lane:
        bt = min(max_bt, (HW // lane) * lane)            # lane-dense, <= HW
    else:
        bt = HW                                          # full-dim block
    n_col_tiles = _cdiv(HW, bt)
    n_par = max(1, min(max_parallel, n_col_tiles))
    t_inner = _cdiv(n_col_tiles, n_par)

    needs_mask = (n_par * t_inner * bt != HW)            # ragged tail / extra tiles
    clamp = (n_par * t_inner > n_col_tiles)              # fully out-of-range tiles

    # Free reshape (row-major preserved): row r = n*C + c of the NCHW tensor.
    p2 = probs.reshape(NC, HW)
    l2 = labels.reshape(NC, HW)

    def in_map(r, p, t):
        col = p * t_inner + t
        if clamp:
            col = jnp.minimum(col, n_col_tiles - 1)      # re-reads last real tile,
        return (r, col)                                  # kernel masks it to zero

    def out_map(r, p, t):
        return (r, p, 0, 0)

    kernel = _make_dice_partials_kernel(nc_tile, bt, HW, t_inner, needs_mask)

    out_sd = jax.ShapeDtypeStruct((n_row, n_par, nc_tile, 1), jnp.float32)
    out_bs = pl.BlockSpec((1, 1, nc_tile, 1), out_map)

    cost = pl.CostEstimate(
        flops=4 * NC * HW,
        transcendentals=0,
        bytes_accessed=NC * HW * (isz_p + isz_l) + 3 * n_row * n_par * nc_tile * 4,
    )

    p_parts, l_parts, i_parts = pl.pallas_call(
        kernel,
        out_shape=(out_sd, out_sd, out_sd),
        grid=(n_row, n_par, t_inner),
        in_specs=[
            pl.BlockSpec((nc_tile, bt), in_map),
            pl.BlockSpec((nc_tile, bt), in_map),
        ],
        out_specs=(out_bs, out_bs, out_bs),
        compiler_params=pltpu.CompilerParams(
            dimension_semantics=("parallel", "parallel", "arbitrary"),
            vmem_limit_bytes=vmem_limit_bytes,
        ),
        cost_estimate=cost,
    )(p2, l2)

    # ---- finish tiny reductions + dice formula in JAX ------------------------
    def finish(parts):
        s = parts.sum(axis=1).reshape(n_row * nc_tile)[:NC]   # drop padded rows
        return s.reshape(N, C).sum(axis=0)                    # sum over batch

    p_sum, l_sum, inter = finish(p_parts), finish(l_parts), finish(i_parts)
    dice = (2.0 * inter + smooth) / (p_sum + l_sum + inter + smooth)
    per_class = 1.0 - dice
    return per_class, jnp.mean(per_class)


def _dice_loss_ref(probs, labels, smooth=1e-06):
    # Pure-JAX reference mirroring the PyTorch per-class loop exactly.
    probs = probs.astype(jnp.float32)
    labels = labels.astype(jnp.float32)
    p_sum = jnp.sum(probs, axis=(0, 2, 3))
    l_sum = jnp.sum(labels, axis=(0, 2, 3))
    inter = jnp.sum(probs * labels, axis=(0, 2, 3))
    dice = (2.0 * inter + smooth) / (p_sum + l_sum + inter + smooth)
    per_class = 1.0 - dice
    return per_class, jnp.mean(per_class)


def _make_inputs(key, N, C, H, W, probs_dtype=jnp.float32, labels_dtype=jnp.float32):
    k1, k2 = jax.random.split(key)
    logits = jax.random.normal(k1, (N, C, H, W), dtype=jnp.float32)
    probs = jax.nn.softmax(logits, axis=1).astype(probs_dtype)
    idx = jax.random.randint(k2, (N, H, W), 0, C)
    labels = jax.nn.one_hot(idx, C, dtype=labels_dtype)     # (N, H, W, C)
    labels = jnp.transpose(labels, (0, 3, 1, 2))            # -> NCHW
    return probs, labels


if __name__ == "__main__":
    key = jax.random.PRNGKey(0)
    k1, k2, k3 = jax.random.split(key, 3)

    # Case 1: canonical small shape (single tile, full-NC block), f32 inputs.
    probs, labels = _make_inputs(k1, 2, 4, 16, 16)
    per_class, total = dice_loss(probs, labels)
    per_class = jax.block_until_ready(per_class)
    total = jax.block_until_ready(total)
    ref_pc, ref_total = _dice_loss_ref(probs, labels)
    assert jnp.allclose(per_class, ref_pc, atol=1e-5, rtol=1e-5)
    assert jnp.allclose(total, ref_total, atol=1e-5, rtol=1e-5)

    # Case 2: ragged HW (300 cols, 128-col tiles), row tiling (NC=15 > nc_cap=8)
    # and a 2-way spatial partition with one fully out-of-range (clamped+masked)
    # tile -- exercises the in-kernel mask / clamp / partial-row paths.
    probs2, labels2 = _make_inputs(k2, 3, 5, 20, 15)
    pc2, tot2 = dice_loss(probs2, labels2, nc_cap=8, max_parallel=2, max_bt_cols=128)
    pc2 = jax.block_until_ready(pc2)
    rpc2, rtot2 = _dice_loss_ref(probs2, labels2)
    assert jnp.allclose(pc2, rpc2, atol=1e-5, rtol=1e-5)
    assert jnp.allclose(tot2, rtot2, atol=1e-5, rtol=1e-5)

    # Case 3: low-precision inputs passed straight through (bf16 probs,
    # int8 one-hot labels) with a ragged spatial tail.
    probs3, labels3 = _make_inputs(k3, 2, 4, 20, 15,
                                   probs_dtype=jnp.bfloat16,
                                   labels_dtype=jnp.int8)
    pc3, tot3 = dice_loss(probs3, labels3, max_bt_cols=128)
    pc3 = jax.block_until_ready(pc3)
    rpc3, rtot3 = _dice_loss_ref(probs3, labels3)
    assert jnp.allclose(pc3, rpc3, atol=1e-4, rtol=1e-4)
    assert jnp.allclose(tot3, rtot3, atol=1e-4, rtol=1e-4)

    print("KERNEL_OK")
</pallas_src>

<mosaic_0001>
module attributes {stable_mosaic.version = 11 : i64} {
  func.func @kernel(%arg0: i32, %arg1: i32, %arg2: i32, %arg3: memref<8x256xf32, #tpu.memory_space<vmem>>, %arg4: memref<8x256xf32, #tpu.memory_space<vmem>>, %arg5: memref<1x1x8x1xf32, #tpu.memory_space<vmem>>, %arg6: memref<1x1x8x1xf32, #tpu.memory_space<vmem>>, %arg7: memref<1x1x8x1xf32, #tpu.memory_space<vmem>>) attributes {dimension_semantics = [#tpu.dimension_semantics<parallel>, #tpu.dimension_semantics<parallel>, #tpu.dimension_semantics<arbitrary>], iteration_bounds = array<i64: 1, 1, 1>, scalar_prefetch = 0 : i64, scratch_operands = 0 : i64, tpu.core_type = #tpu.core_type<tc>, window_params = [{transform_indices = @transform_0, window_bounds = array<i64: 8, 256>}, {transform_indices = @transform_1, window_bounds = array<i64: 8, 256>}, {transform_indices = @transform_2, window_bounds = array<i64: 1, 1, 8, 1>}, {transform_indices = @transform_3, window_bounds = array<i64: 1, 1, 8, 1>}, {transform_indices = @transform_4, window_bounds = array<i64: 1, 1, 8, 1>}]} {
    %c0_i32 = arith.constant 0 : i32
    %0 = arith.cmpi eq, %arg2, %c0_i32 : i32
    %1 = arith.extui %0 : i1 to i32
    %c0_i32_0 = arith.constant 0 : i32
    %2 = arith.cmpi ne, %1, %c0_i32_0 : i32
    scf.if %2 {
      %cst_30 = arith.constant 0.000000e+00 : f32
      %24 = vector.broadcast %cst_30 : f32 to vector<1x1x8x1xf32>
      %c0_31 = arith.constant 0 : index
      %c0_32 = arith.constant 0 : index
      %c0_33 = arith.constant 0 : index
      %c0_34 = arith.constant 0 : index
      %25 = vector.load %arg5[%c0_31, %c0_32, %c0_33, %c0_34] : memref<1x1x8x1xf32, #tpu.memory_space<vmem>>, vector<1x1x8x1xf32>
      tpu.vector_store %arg5[%c0_31, %c0_32, %c0_33, %c0_34], %24 {strides = array<i32>} : memref<1x1x8x1xf32, #tpu.memory_space<vmem>>, vector<1x1x8x1xf32>,
      %cst_35 = arith.constant 0.000000e+00 : f32
      %26 = vector.broadcast %cst_35 : f32 to vector<1x1x8x1xf32>
      %c0_36 = arith.constant 0 : index
      %c0_37 = arith.constant 0 : index
      %c0_38 = arith.constant 0 : index
      %c0_39 = arith.constant 0 : index
      %27 = vector.load %arg6[%c0_36, %c0_37, %c0_38, %c0_39] : memref<1x1x8x1xf32, #tpu.memory_space<vmem>>, vector<1x1x8x1xf32>
      tpu.vector_store %arg6[%c0_36, %c0_37, %c0_38, %c0_39], %26 {strides = array<i32>} : memref<1x1x8x1xf32, #tpu.memory_space<vmem>>, vector<1x1x8x1xf32>,
      %cst_40 = arith.constant 0.000000e+00 : f32
      %28 = vector.broadcast %cst_40 : f32 to vector<1x1x8x1xf32>
      %c0_41 = arith.constant 0 : index
      %c0_42 = arith.constant 0 : index
      %c0_43 = arith.constant 0 : index
      %c0_44 = arith.constant 0 : index
      %29 = vector.load %arg7[%c0_41, %c0_42, %c0_43, %c0_44] : memref<1x1x8x1xf32, #tpu.memory_space<vmem>>, vector<1x1x8x1xf32>
      tpu.vector_store %arg7[%c0_41, %c0_42, %c0_43, %c0_44], %28 {strides = array<i32>} : memref<1x1x8x1xf32, #tpu.memory_space<vmem>>, vector<1x1x8x1xf32>,
    } else {
    }
    %c0 = arith.constant 0 : index
    %c0_1 = arith.constant 0 : index
    %3 = vector.load %arg3[%c0, %c0_1] : memref<8x256xf32, #tpu.memory_space<vmem>>, vector<8x256xf32>
    %c0_2 = arith.constant 0 : index
    %c0_3 = arith.constant 0 : index
    %4 = vector.load %arg4[%c0_2, %c0_3] : memref<8x256xf32, #tpu.memory_space<vmem>>, vector<8x256xf32>
    %c0_4 = arith.constant 0 : index
    %c0_5 = arith.constant 0 : index
    %c0_6 = arith.constant 0 : index
    %c0_7 = arith.constant 0 : index
    %5 = vector.load %arg5[%c0_4, %c0_5, %c0_6, %c0_7] : memref<1x1x8x1xf32, #tpu.memory_space<vmem>>, vector<1x1x8x1xf32>
    %cst = arith.constant dense<0.000000e+00> : vector<8xf32>
    %6 = vector.multi_reduction <add>, %3, %cst [1] : vector<8x256xf32> to vector<8xf32>
    %7 = vector.shape_cast %6 : vector<8xf32> to vector<8x1xf32>
    %8 = vector.shape_cast %7 : vector<8x1xf32> to vector<1x1x8x1xf32>
    %9 = arith.addf %5, %8 : vector<1x1x8x1xf32>
    %c0_8 = arith.constant 0 : index
    %c0_9 = arith.constant 0 : index
    %c0_10 = arith.constant 0 : index
    %c0_11 = arith.constant 0 : index
    %10 = vector.load %arg5[%c0_8, %c0_9, %c0_10, %c0_11] : memref<1x1x8x1xf32, #tpu.memory_space<vmem>>, vector<1x1x8x1xf32>
    tpu.vector_store %arg5[%c0_8, %c0_9, %c0_10, %c0_11], %9 {strides = array<i32>} : memref<1x1x8x1xf32, #tpu.memory_space<vmem>>, vector<1x1x8x1xf32>,
    %c0_12 = arith.constant 0 : index
    %c0_13 = arith.constant 0 : index
    %c0_14 = arith.constant 0 : index
    %c0_15 = arith.constant 0 : index
    %11 = vector.load %arg6[%c0_12, %c0_13, %c0_14, %c0_15] : memref<1x1x8x1xf32, #tpu.memory_space<vmem>>, vector<1x1x8x1xf32>
    %cst_16 = arith.constant dense<0.000000e+00> : vector<8xf32>
    %12 = vector.multi_reduction <add>, %4, %cst_16 [1] : vector<8x256xf32> to vector<8xf32>
    %13 = vector.shape_cast %12 : vector<8xf32> to vector<8x1xf32>
    %14 = vector.shape_cast %13 : vector<8x1xf32> to vector<1x1x8x1xf32>
    %15 = arith.addf %11, %14 : vector<1x1x8x1xf32>
    %c0_17 = arith.constant 0 : index
    %c0_18 = arith.constant 0 : index
    %c0_19 = arith.constant 0 : index
    %c0_20 = arith.constant 0 : index
    %16 = vector.load %arg6[%c0_17, %c0_18, %c0_19, %c0_20] : memref<1x1x8x1xf32, #tpu.memory_space<vmem>>, vector<1x1x8x1xf32>
    tpu.vector_store %arg6[%c0_17, %c0_18, %c0_19, %c0_20], %15 {strides = array<i32>} : memref<1x1x8x1xf32, #tpu.memory_space<vmem>>, vector<1x1x8x1xf32>,
    %c0_21 = arith.constant 0 : index
    %c0_22 = arith.constant 0 : index
    %c0_23 = arith.constant 0 : index
    %c0_24 = arith.constant 0 : index
    %17 = vector.load %arg7[%c0_21, %c0_22, %c0_23, %c0_24] : memref<1x1x8x1xf32, #tpu.memory_space<vmem>>, vector<1x1x8x1xf32>
    %18 = arith.mulf %3, %4 : vector<8x256xf32>
    %cst_25 = arith.constant dense<0.000000e+00> : vector<8xf32>
    %19 = vector.multi_reduction <add>, %18, %cst_25 [1] : vector<8x256xf32> to vector<8xf32>
    %20 = vector.shape_cast %19 : vector<8xf32> to vector<8x1xf32>
    %21 = vector.shape_cast %20 : vector<8x1xf32> to vector<1x1x8x1xf32>
    %22 = arith.addf %17, %21 : vector<1x1x8x1xf32>
    %c0_26 = arith.constant 0 : index
    %c0_27 = arith.constant 0 : index
    %c0_28 = arith.constant 0 : index
    %c0_29 = arith.constant 0 : index
    %23 = vector.load %arg7[%c0_26, %c0_27, %c0_28, %c0_29] : memref<1x1x8x1xf32, #tpu.memory_space<vmem>>, vector<1x1x8x1xf32>
    tpu.vector_store %arg7[%c0_26, %c0_27, %c0_28, %c0_29], %22 {strides = array<i32>} : memref<1x1x8x1xf32, #tpu.memory_space<vmem>>, vector<1x1x8x1xf32>,
    return
  }
  func.func @transform_0(%arg0: i32, %arg1: i32, %arg2: i32) -> (i32, i32) {
    %c1_i32 = arith.constant 1 : i32
    %0 = arith.muli %arg1, %c1_i32 : i32
    %1 = arith.addi %0, %arg2 : i32
    %c0_i32 = arith.constant 0 : i32
    return %arg0, %1 : i32, i32
  }
  func.func @transform_1(%arg0: i32, %arg1: i32, %arg2: i32) -> (i32, i32) {
    %c1_i32 = arith.constant 1 : i32
    %0 = arith.muli %arg1, %c1_i32 : i32
    %1 = arith.addi %0, %arg2 : i32
    %c0_i32 = arith.constant 0 : i32
    return %arg0, %1 : i32, i32
  }
  func.func @transform_2(%arg0: i32, %arg1: i32, %arg2: i32) -> (i32, i32, i32, i32) {
    %c0_i32 = arith.constant 0 : i32
    %c0_i32_0 = arith.constant 0 : i32
    %c0_i32_1 = arith.constant 0 : i32
    return %arg0, %arg1, %c0_i32, %c0_i32_0 : i32, i32, i32, i32
  }
  func.func @transform_3(%arg0: i32, %arg1: i32, %arg2: i32) -> (i32, i32, i32, i32) {
    %c0_i32 = arith.constant 0 : i32
    %c0_i32_0 = arith.constant 0 : i32
    %c0_i32_1 = arith.constant 0 : i32
    return %arg0, %arg1, %c0_i32, %c0_i32_0 : i32, i32, i32, i32
  }
  func.func @transform_4(%arg0: i32, %arg1: i32, %arg2: i32) -> (i32, i32, i32, i32) {
    %c0_i32 = arith.constant 0 : i32
    %c0_i32_0 = arith.constant 0 : i32
    %c0_i32_1 = arith.constant 0 : i32
    return %arg0, %arg1, %c0_i32, %c0_i32_0 : i32, i32, i32, i32
  }
}

</mosaic_0001>

<bundles_post_ra>
// kernel: tpu_custom_call.1
= control target key start
LH: loop header
LB: loop body
LE: loop exit
PB: predicated region body
PF: predicated region fallthrough
CT: control target
= control target key end

     0   :  { %10 = vsyncpa [#allocation3], 0  ;;  %s223_s0 = inlined_call_operand.hbm [shape: f32[8,256], index: 0, kind: input, shape index: {}]   ;;  %s224_s1 = inlined_call_operand.hbm [shape: f32[8,256], index: 1, kind: input, shape index: {}]   ;;  %s225_s2 = inlined_call_operand.vmem [shape: f32[1,1,8,1], index: 2, kind: output, shape index: {0}]   ;;  %s226_s3 = inlined_call_operand.vmem [shape: f32[1,1,8,1], index: 3, kind: output, shape index: {1}]   ;;  %s227_s4 = inlined_call_operand.vmem [shape: f32[1,1,8,1], index: 4, kind: output, shape index: {2}]  }
   0x1   :  { %s21_s17 = sshll.u32 %s223_s0, 4  ;;  %s22_s17 = int_to_ptr.hbm [resolvable:$true] %s21_s17 }
   0x2   :  { %11 = vsyncpa [#allocation5], 0  ;;  %s156_s18 = smov [#allocation2]   ;;  %s36_s22 = sshll.u32 %s224_s1, 4  ;;  %s37_s22 = int_to_ptr.hbm [resolvable:$true] %s36_s22 }
   0x3   :  { %s23_s19 = sshll.u32 %s156_s18, 4  ;;  %s157_s23 = smov [#allocation4]   ;;  %s24_s19 = int_to_ptr.vmem [resolvable:$true] %s23_s19 }
   0x4   :  { %26 = dma.hbm_to_vmem [thread:$0]  %s22_s17, 256, %s24_s19, [#allocation3]  }
   0x5   :  { %s38_s24 = sshll.u32 %s157_s23, 4  ;;  %s39_s24 = int_to_ptr.vmem [resolvable:$true] %s38_s24 }
   0x6   :  { %41 = dma.hbm_to_vmem [thread:$0]  %s37_s22, 256, %s39_s24, [#allocation5]  }
   0x7   :  { %152 = dma.done.wait [#allocation3], 256  }
   0x8   :  { %153 = vsyncadd [#allocation3], 4294967040 }
   0x9   :  { %154 = dma.done.wait [#allocation5], 256  }
   0xa   :  { %155 = vsyncadd [#allocation5], 4294967040  ;;  %vm58_vm0 = vcmask 7168   ;;  %v158_v0 = vmov 0.0   ;;  %v62_v1 = vld [vmem:[#allocation2] sm:$0xff]  ;;  %v63_v2 = vld [vmem:[#allocation2 + $0x8] sm:$0xff] }
   0xb   :  { %59 = vst.msk [vmem:[%s225_s2] sm:$0xff] %vm58_vm0, %v158_v0  ;;  %v64_v3 = vld [vmem:[#allocation4] sm:$0xff]  ;;  %v67_v4 = vadd.f32 %v63_v2, %v62_v1  ;;  %v65_v5 = vld [vmem:[#allocation4 + $0x8] sm:$0xff] }
   0xc   :  { %60 = vst.msk [vmem:[%s226_s3] sm:$0xff] %vm58_vm0, %v158_v0  ;;  %v80_v6 = vmul.f32 %v64_v3, %v62_v1  ;;  %v81_v7 = vmul.f32 %v65_v5, %v63_v2  ;;  %v74_v9 = vadd.f32 %v65_v5, %v64_v3 }
   0xd   :  { %61 = vst.msk [vmem:[%s227_s4] sm:$0xff] %vm58_vm0, %v158_v0  ;;  %68 = vadd.xlane.f32.xlu0 %v67_v4 }
   0xe   :  { %v82_v8 = vadd.f32 %v81_v7, %v80_v6 }
  0x10   :  { %83 = vadd.xlane.f32.xlu1 %v82_v8 }
  0x12   :  { %v66_v10 = vld [vmem:[%s225_s2] sm:$0xff] }
  0x13   :  { %v73_v16 = vld [vmem:[%s226_s3] sm:$0xff] }
  0x14   :  { %v79_v13 = vld [vmem:[%s227_s4] sm:$0xff] }
  0x15   :  { %75 = vadd.xlane.f32.xlu0 %v74_v9 }
  0x80   :  { %v69_v11 = vpop.xlane.xlu0 %68 }
  0x81   :  { %v70_v12 = vadd.f32 %v69_v11, %v66_v10 }
  0x83   :  { %72 = vst.msk [vmem:[%s225_s2] sm:$0xff] %vm58_vm0, %v70_v12  ;;  %v84_v14 = vpop.xlane.xlu1 %83 }
  0x84   :  { %v85_v15 = vadd.f32 %v84_v14, %v79_v13 }
  0x86   :  { %86 = vst.msk [vmem:[%s227_s4] sm:$0xff] %vm58_vm0, %v85_v15 }
  0x88   :  { %v76_v17 = vpop.xlane.xlu0 %75 }
  0x89   :  { %v77_v18 = vadd.f32 %v76_v17, %v73_v16 }
  0x8b   :  { %78 = vst.msk [vmem:[%s226_s3] sm:$0xff] %vm58_vm0, %v77_v18 }
  0x8c   :  { %99 = vsyncpa [#allocation3], 1 }
  0x8d   :  { %100 = vsyncpa [#allocation5], 1 }

</bundles_post_ra>
